<compile_context>
chip_gen: v5e
topology: v5e:2x2
jax: 0.10.0
libtpu: 0.0.40
codegen_flags: <defaults>
</compile_context>

<pallas_src>
import jax
import jax.numpy as jnp
from jax import lax
from jax.experimental import pallas as pl
from jax.experimental.pallas import tpu as pltpu

_F = 4   # 3 RGB channels + 1 ones row (folded bias)
_H = 64  # hidden width


def _round_up(n, m):
    return ((n + m - 1) // m) * m


def _tpu_is_modern():
    """True on v6e / v7x (256x256 MXU + bf16 VPU); False on v5e and older."""
    try:
        kind = jax.devices()[0].device_kind.lower()
    except Exception:
        kind = ""
    return any(tag in kind for tag in ("v6", "v7", "7x"))


def _choose_tiling(N, g, tile_lanes, chunk_lanes):
    """Pick (lane_tile, lane_chunk, padded_lanes M, n_steps) for the packed (Fg, M) slab."""
    m_needed = -(-N // g)                        # lanes actually required (each lane = g points)
    m128 = _round_up(max(m_needed, 1), 128)
    chunk = _round_up(max(chunk_lanes, 128), 128)
    tile = _round_up(max(tile_lanes, chunk), chunk)   # chunk | tile
    if tile >= m128:
        # Whole problem fits in one tile: shrink so there are >=2 grid steps (when the
        # data allows) so both v7x TensorCores get work.
        tile = _round_up(-(-m128 // 2), 128) if m128 >= 256 else m128
        chunk = min(chunk, tile)
        tile = _round_up(tile, chunk)
    n_steps = -(-m128 // tile)
    if n_steps > 1 and n_steps % 2 == 1:
        n_steps += 1                              # even step count -> no idle-core tail step
    return tile, chunk, n_steps * tile, n_steps


def _make_kernel(n_chunks, chunk, mxu_dtype, act_dtype):
    """Fused packed MLP. x_ref: (4g, TILE); o_ref: (g, TILE)."""

    def kernel(x_ref, w1_ref, w2_ref, b2_ref, w3_ref, b3_ref, o_ref):
        # Grid-invariant weights: loaded once per grid step, resident in VMEM across steps.
        w1 = w1_ref[...]          # (64g, 4g)   block-diag [W1 | b1], mxu dtype
        w2 = w2_ref[...]          # (64g, 64g)  block-diag W2,        mxu dtype
        b2 = b2_ref[...]          # (64g, 1)    act dtype
        w3 = w3_ref[...]          # (g, 64g)    block-diag w3 row,    mxu dtype
        b3 = b3_ref[...]          # (g, 1)      f32

        def body(c, carry):
            lo = pl.multiple_of(c * chunk, chunk)
            xc = x_ref[:, pl.ds(lo, chunk)]                               # (4g, chunk)
            # Layer 1 (+ folded bias): block-diag MXU matmul.
            h1 = jnp.dot(w1, xc, preferred_element_type=act_dtype)        # (64g, chunk)
            h1 = jnp.maximum(h1, 0.0).astype(mxu_dtype)
            # Layer 2: the dominant matmul, now filling the MXU stationary array.
            h2 = jnp.dot(w2, h1, preferred_element_type=act_dtype)        # (64g, chunk)
            h2 = jnp.maximum(h2 + b2, 0.0).astype(mxu_dtype)
            # Layer 3 on the MXU (tiny block-diag matmul), f32 accumulate + f32 bias.
            out = jnp.dot(w3, h2, preferred_element_type=jnp.float32) + b3  # (g, chunk)
            o_ref[:, pl.ds(lo, chunk)] = out.astype(o_ref.dtype)
            return carry

        lax.fori_loop(0, n_chunks, body, 0, unroll=(n_chunks <= 8))

    return kernel


def rgb_to_dz(x, params, *, tile_lanes=4096, chunk_lanes=512, group=None,
              use_bf16=True, bf16_act=None):
    """x: (N, 3) float32. params: torch-layout dict (see init_params). Returns (N, 1) f32."""
    N, feat = x.shape
    assert feat == 3
    modern = _tpu_is_modern()

    g = int(group) if group is not None else (4 if modern else 2)
    mxu_dtype = jnp.bfloat16 if use_bf16 else jnp.float32
    if bf16_act is None:
        bf16_act = use_bf16 and modern            # bf16 VPU only exists on v6e/v7x
    act_dtype = jnp.bfloat16 if (use_bf16 and bf16_act) else jnp.float32

    tile, chunk, M, _ = _choose_tiling(N, g, tile_lanes, chunk_lanes)
    n_pad = g * M

    # ---- packed (block-diagonal) weights ----------------------------------------
    eye = jnp.eye(g, dtype=jnp.float32)
    w1a = jnp.concatenate([params["w1"], params["b1"][:, None]], axis=1)  # (64, 4) = [W1 | b1]
    w1p = jnp.kron(eye, w1a).astype(mxu_dtype)                            # (64g, 4g)
    w2p = jnp.kron(eye, params["w2"]).astype(mxu_dtype)                   # (64g, 64g)
    b2p = jnp.tile(params["b2"], g)[:, None].astype(act_dtype)            # (64g, 1)
    w3p = jnp.kron(eye, params["w3"]).astype(mxu_dtype)                   # (g, 64g)
    b3p = jnp.tile(params["b3"], g)[:, None].astype(jnp.float32)          # (g, 1)

    # ---- grouped, feature-major input slab ---------------------------------------
    # TODO(synk): this cast + ones-append + pad + group-reshape is a standalone XLA
    # pre-pass over x; if the producer can emit channel-major grouped data directly
    # (or this is fused into the producer op), that extra HBM pass disappears.
    ones = jnp.ones((N, 1), jnp.float32)
    x_aug = jnp.concatenate([x.astype(jnp.float32), ones], axis=1)        # (N, 4)
    x_aug = jnp.pad(x_aug, ((0, n_pad - N), (0, 0))).astype(mxu_dtype)    # (n_pad, 4)
    # point p = j*M + c  ->  slab rows [4j:4(j+1)], column c
    xg = x_aug.reshape(g, M, _F).transpose(0, 2, 1).reshape(g * _F, M)    # (4g, M)

    const = lambda i: (0, 0)   # grid-invariant blocks: Pallas elides the re-DMA

    kernel = _make_kernel(tile // chunk, chunk, mxu_dtype, act_dtype)

    outg = pl.pallas_call(
        kernel,
        out_shape=jax.ShapeDtypeStruct((g, M), jnp.float32),
        grid=(M // tile,),
        in_specs=[
            pl.BlockSpec((g * _F, tile), lambda i: (0, i)),   # lane-dense input tile
            pl.BlockSpec(w1p.shape, const),
            pl.BlockSpec(w2p.shape, const),
            pl.BlockSpec(b2p.shape, const),
            pl.BlockSpec(w3p.shape, const),
            pl.BlockSpec(b3p.shape, const),
        ],
        out_specs=pl.BlockSpec((g, tile), lambda i: (0, i)),  # lane-dense output tile
        compiler_params=pltpu.CompilerParams(
            dimension_semantics=("parallel",),
            # Well under the v7x 64 MiB physical VMEM (review guidance: <= ~48 MiB);
            # also safely above v5e's 16 MiB default scoped limit.
            vmem_limit_bytes=32 * 1024 * 1024,
        ),
    )(xg, w1p, w2p, b2p, w3p, b3p)

    # (g, M) -> (n_pad, 1) is a pure row-major reshape (point order preserved); trim pad.
    return outg.reshape(n_pad, 1)[:N]


def init_params(key):
    """PyTorch default Linear init (U[-1/sqrt(fan_in), +]) in torch (out, in) layout."""
    k = jax.random.split(key, 6)

    def linear(kw, kb, fan_in, fan_out):
        bound = 1.0 / jnp.sqrt(float(fan_in))
        w = jax.random.uniform(kw, (fan_out, fan_in), jnp.float32, -bound, bound)
        b = jax.random.uniform(kb, (fan_out,), jnp.float32, -bound, bound)
        return w, b

    w1, b1 = linear(k[0], k[1], 3, 64)
    w2, b2 = linear(k[2], k[3], 64, 64)
    w3, b3 = linear(k[4], k[5], 64, 1)
    return {"w1": w1, "b1": b1, "w2": w2, "b2": b2, "w3": w3, "b3": b3}


def _reference(x, p, mxu_dtype=jnp.float32, act_dtype=jnp.float32):
    """Pure-JAX reference. With f32 dtypes this is exactly the torch forward; with bf16
    dtypes it mirrors the kernel's quantization points (operands + intermediates)."""
    N = x.shape[0]
    xa = jnp.concatenate([x.astype(jnp.float32), jnp.ones((N, 1), jnp.float32)],
                         axis=1).astype(mxu_dtype)                               # (N, 4)
    w1a = jnp.concatenate([p["w1"], p["b1"][:, None]], axis=1).astype(mxu_dtype)  # (64, 4)
    h1 = jnp.dot(xa, w1a.T, preferred_element_type=act_dtype)
    h1 = jnp.maximum(h1, 0.0).astype(mxu_dtype)
    h2 = jnp.dot(h1, p["w2"].astype(mxu_dtype).T, preferred_element_type=act_dtype)
    h2 = jnp.maximum(h2 + p["b2"].astype(act_dtype), 0.0).astype(mxu_dtype)
    out = jnp.dot(h2, p["w3"].astype(mxu_dtype).T, preferred_element_type=jnp.float32)
    return out + p["b3"].astype(jnp.float32)


if __name__ == "__main__":
    key = jax.random.PRNGKey(0)
    kx, kp = jax.random.split(key)

    N = 300  # small, deliberately NOT a multiple of 128/group to exercise pad + trim
    x = jax.random.uniform(kx, (N, 3), jnp.float32)   # RGB in [0, 1)
    params = init_params(kp)

    ref_f32 = _reference(x, params)

    # f32 path: tight check against the exact f32 model.
    out_f32 = jax.block_until_ready(rgb_to_dz(x, params, use_bf16=False))
    assert out_f32.shape == (N, 1)
    assert jnp.allclose(out_f32, ref_f32, atol=2e-5, rtol=2e-5), "f32 kernel mismatch"

    # bf16-MXU path (default): check against a precision-matched reference...
    out_bf16 = jax.block_until_ready(rgb_to_dz(x, params, use_bf16=True))
    assert out_bf16.shape == (N, 1)
    act = jnp.bfloat16 if _tpu_is_modern() else jnp.float32
    ref_bf16 = _reference(x, params, jnp.bfloat16, act)
    assert jnp.allclose(out_bf16, ref_bf16, atol=3e-2, rtol=3e-2), "bf16 kernel mismatch"
    # ...and bound its drift vs the f32 PyTorch model (review correctness concern #1).
    max_drift = float(jnp.max(jnp.abs(out_bf16 - ref_f32)))
    assert max_drift < 1e-1, f"bf16 drift vs f32 model too large: {max_drift}"

    print("KERNEL_OK")
</pallas_src>

<mosaic_0001>
module attributes {stable_mosaic.version = 11 : i64} {
  func.func @kernel(%arg0: i32, %arg1: memref<8x128xf32, #tpu.memory_space<vmem>>, %arg2: memref<128x8xf32, #tpu.memory_space<vmem>>, %arg3: memref<128x128xf32, #tpu.memory_space<vmem>>, %arg4: memref<128x1xf32, #tpu.memory_space<vmem>>, %arg5: memref<2x128xf32, #tpu.memory_space<vmem>>, %arg6: memref<2x1xf32, #tpu.memory_space<vmem>>, %arg7: memref<2x128xf32, #tpu.memory_space<vmem>>) attributes {dimension_semantics = [#tpu.dimension_semantics<parallel>], iteration_bounds = array<i64: 2>, scalar_prefetch = 0 : i64, scratch_operands = 0 : i64, tpu.core_type = #tpu.core_type<tc>, window_params = [{transform_indices = @transform_0, window_bounds = array<i64: 8, 128>}, {pipeline_mode = #tpu.pipeline_mode<synchronous>, transform_indices = @transform_1, window_bounds = array<i64: 128, 8>}, {pipeline_mode = #tpu.pipeline_mode<synchronous>, transform_indices = @transform_2, window_bounds = array<i64: 128, 128>}, {pipeline_mode = #tpu.pipeline_mode<synchronous>, transform_indices = @transform_3, window_bounds = array<i64: 128, 1>}, {pipeline_mode = #tpu.pipeline_mode<synchronous>, transform_indices = @transform_4, window_bounds = array<i64: 2, 128>}, {pipeline_mode = #tpu.pipeline_mode<synchronous>, transform_indices = @transform_5, window_bounds = array<i64: 2, 1>}, {transform_indices = @transform_6, window_bounds = array<i64: 2, 128>}]} {
    %c0 = arith.constant 0 : index
    %c0_0 = arith.constant 0 : index
    %0 = vector.load %arg2[%c0, %c0_0] : memref<128x8xf32, #tpu.memory_space<vmem>>, vector<128x8xf32>
    %c0_1 = arith.constant 0 : index
    %c0_2 = arith.constant 0 : index
    %1 = vector.load %arg3[%c0_1, %c0_2] : memref<128x128xf32, #tpu.memory_space<vmem>>, vector<128x128xf32>
    %c0_3 = arith.constant 0 : index
    %c0_4 = arith.constant 0 : index
    %2 = vector.load %arg4[%c0_3, %c0_4] : memref<128x1xf32, #tpu.memory_space<vmem>>, vector<128x1xf32>
    %c0_5 = arith.constant 0 : index
    %c0_6 = arith.constant 0 : index
    %3 = vector.load %arg5[%c0_5, %c0_6] : memref<2x128xf32, #tpu.memory_space<vmem>>, vector<2x128xf32>
    %c0_7 = arith.constant 0 : index
    %c0_8 = arith.constant 0 : index
    %4 = vector.load %arg6[%c0_7, %c0_8] : memref<2x1xf32, #tpu.memory_space<vmem>>, vector<2x1xf32>
    %c0_i32 = arith.constant 0 : i32
    %c128_i32 = arith.constant 128 : i32
    %5 = arith.muli %c0_i32, %c128_i32 : i32
    %6 = tpu.assume_multiple %5, 128 : i32
    %c0_9 = arith.constant 0 : index
    %7 = arith.index_cast %6 : i32 to index
    %8 = vector.load %arg1[%c0_9, %7] : memref<8x128xf32, #tpu.memory_space<vmem>>, vector<8x128xf32>
    %cst = arith.constant dense<0.000000e+00> : vector<128x128xf32>
    %9 = tpu.matmul %0, %8, %cst {dimension_numbers = #tpu.dot_dimension_numbers<[1], [0], [0], [1], [0, 0, 1, 1], [], []>} : vector<128x8xf32>, vector<8x128xf32>, vector<128x128xf32> -> vector<128x128xf32>
    %cst_10 = arith.constant 0.000000e+00 : f32
    %10 = vector.broadcast %cst_10 : f32 to vector<128x128xf32>
    %11 = arith.maximumf %9, %10 : vector<128x128xf32>
    %cst_11 = arith.constant dense<0.000000e+00> : vector<128x128xf32>
    %12 = tpu.matmul %1, %11, %cst_11 {dimension_numbers = #tpu.dot_dimension_numbers<[1], [0], [0], [1], [0, 0, 1, 1], [], []>} : vector<128x128xf32>, vector<128x128xf32>, vector<128x128xf32> -> vector<128x128xf32>
    %13 = vector.broadcast %2 : vector<128x1xf32> to vector<128x128xf32>
    %14 = arith.addf %12, %13 : vector<128x128xf32>
    %cst_12 = arith.constant 0.000000e+00 : f32
    %15 = vector.broadcast %cst_12 : f32 to vector<128x128xf32>
    %16 = arith.maximumf %14, %15 : vector<128x128xf32>
    %cst_13 = arith.constant dense<0.000000e+00> : vector<2x128xf32>
    %17 = tpu.matmul %3, %16, %cst_13 {dimension_numbers = #tpu.dot_dimension_numbers<[1], [0], [0], [1], [0, 0, 1, 1], [], []>} : vector<2x128xf32>, vector<128x128xf32>, vector<2x128xf32> -> vector<2x128xf32>
    %18 = vector.broadcast %4 : vector<2x1xf32> to vector<2x128xf32>
    %19 = arith.addf %17, %18 : vector<2x128xf32>
    %c0_14 = arith.constant 0 : index
    %20 = arith.index_cast %6 : i32 to index
    %21 = vector.load %arg7[%c0_14, %20] : memref<2x128xf32, #tpu.memory_space<vmem>>, vector<2x128xf32>
    tpu.vector_store %arg7[%c0_14, %20], %19 {strides = array<i32>} : memref<2x128xf32, #tpu.memory_space<vmem>>, vector<2x128xf32>,
    %c1_i32 = arith.constant 1 : i32
    return
  }
  func.func @transform_0(%arg0: i32) -> (i32, i32) {
    %c0_i32 = arith.constant 0 : i32
    %c0_i32_0 = arith.constant 0 : i32
    return %c0_i32, %arg0 : i32, i32
  }
  func.func @transform_1(%arg0: i32) -> (i32, i32) {
    %c0_i32 = arith.constant 0 : i32
    %c0_i32_0 = arith.constant 0 : i32
    %c0_i32_1 = arith.constant 0 : i32
    return %c0_i32, %c0_i32_0 : i32, i32
  }
  func.func @transform_2(%arg0: i32) -> (i32, i32) {
    %c0_i32 = arith.constant 0 : i32
    %c0_i32_0 = arith.constant 0 : i32
    %c0_i32_1 = arith.constant 0 : i32
    return %c0_i32, %c0_i32_0 : i32, i32
  }
  func.func @transform_3(%arg0: i32) -> (i32, i32) {
    %c0_i32 = arith.constant 0 : i32
    %c0_i32_0 = arith.constant 0 : i32
    %c0_i32_1 = arith.constant 0 : i32
    return %c0_i32, %c0_i32_0 : i32, i32
  }
  func.func @transform_4(%arg0: i32) -> (i32, i32) {
    %c0_i32 = arith.constant 0 : i32
    %c0_i32_0 = arith.constant 0 : i32
    %c0_i32_1 = arith.constant 0 : i32
    return %c0_i32, %c0_i32_0 : i32, i32
  }
  func.func @transform_5(%arg0: i32) -> (i32, i32) {
    %c0_i32 = arith.constant 0 : i32
    %c0_i32_0 = arith.constant 0 : i32
    %c0_i32_1 = arith.constant 0 : i32
    return %c0_i32, %c0_i32_0 : i32, i32
  }
  func.func @transform_6(%arg0: i32) -> (i32, i32) {
    %c0_i32 = arith.constant 0 : i32
    %c0_i32_0 = arith.constant 0 : i32
    return %c0_i32, %arg0 : i32, i32
  }
}

</mosaic_0001>

<bundles_post_ra>
// kernel: tpu_custom_call.1
= control target key start
LH: loop header
LB: loop body
LE: loop exit
PB: predicated region body
PF: predicated region fallthrough
CT: control target
= control target key end

     0   :  { %11 = vsyncpa [#allocation3], 0  ;;  %s1145_s0 = inlined_call_operand.vmem [shape: f32[8,256], index: 0, kind: input, shape index: {}]   ;;  %s1146_s1 = inlined_call_operand.vmem [shape: f32[128,8], index: 1, kind: input, shape index: {}]   ;;  %s1147_s2 = inlined_call_operand.vmem [shape: f32[128,128], index: 2, kind: input, shape index: {}]   ;;  %s1148_s3 = inlined_call_operand.vmem [shape: f32[128,1], index: 3, kind: input, shape index: {}]   ;;  %s1149_s4 = inlined_call_operand.vmem [shape: f32[2,128], index: 4, kind: input, shape index: {}]   ;;  %s1150_s5 = inlined_call_operand.vmem [shape: f32[2,1], index: 5, kind: input, shape index: {}]   ;;  %s1151_s6 = inlined_call_operand.hbm [shape: f32[2,256], index: 6, kind: output, shape index: {}]  }
   0x1   :  { %13 = vsyncpa [#allocation3 + $0x1], 0  ;;  %s876_s21 = smov 0   ;;  %s878_s22 = smov 0  }
   0x2   :  { %s880_s23 = smov 0   ;;  %s882_s24 = smov 0  }
   0x3 LB: > { %s897_s25 = sadd.s32 4294967295, %s838_s24   ;;  %s690_s26 = sadd.s32 4294967294, %s838_s24   ;;  %s838_s24 = sphi %s882_s24, %s1157_s24   ;;  %s834_s23 = sphi %s880_s23, %s1156_s23   ;;  %s830_s22 = sphi %s878_s22, %s1155_s22   ;;  %s826_s21 = sphi %s876_s21, %s1154_s21  }
   0x4   : > { %s901_s27 = sadd.s32 1, %s838_s24   ;;  %s157_s28 = sadd.s32 1, %s834_s23 }
   0x5   : > { %s154_s29 = ssub.s32 %s838_s24, %s901_s27  ;;  %p167_p0 = scmp.ne.s32.totalorder %s834_s23, %s830_s22 }
   0x6   : > { %p155_p1 = scmp.eq.s32.totalorder %s154_s29, 0  ;;  %p168_p2 = scmp.eq.s32.totalorder %s897_s25, 1 }
   0x7   : > { %p173_p3 = scmp.ne.s32.totalorder %s830_s22, %s826_s21  ;;  %p174_p4 = scmp.eq.s32.totalorder %s690_s26, 1 }
   0x8   : > { %s912_s30 = scalar_select %p155_p1, %s834_s23, %s157_s28  }
   0x9   : > { %p914_p5 = por %p168_p2, %p167_p0  ;;  %p918_p6 = por %p174_p4, %p173_p3 }
   0xa   : > { %p693_p7 = scmp.ge.s32.totalorder %s838_s24, 1  ;;  %p214_p8 = scmp.lt.s32.totalorder %s838_s24, 3 }
   0xc   : > { %p215_p9 = pnand %p693_p7, %p214_p8 }
   0xd   : > { %p243_p10 = scmp.lt.s32.totalorder (!%p215_p9), %s897_s25, 1  ;;  %s713_s11 = sshll.u32 (!%p215_p9), %s897_s25, 1 }
   0xe   : > { %218 = sbr.rel (%p215_p9) target bundleno = 614 (0x266), region = 44  ;;  %s626_s14 = scalar_lea.hbm (!%p215_p9), %s1151_s6, %s713_s11 }
   0xf   : > { %s630_s17 = sshll.u32 (!%p215_p9), %s626_s14, 4  ;;  %s796_s28 = scalar_lea.hbm (!%p215_p9), %s1151_s6, 4  ;;  %s631_s17 = int_to_ptr.hbm [resolvable:$true] %s630_s17 }
  0x10   : > { %s790_s19 = sshra.s32 (!%p215_p9), %s631_s17, 4  ;;  %s791_s19 = int_to_ptr.hbm [resolvable:$true] %s790_s19 }
  0x11   : > { %s792_s20 = scalar_lea.hbm (!%p215_p9), %s791_s19, 2  ;;  %p797_p0 = scmp.lt.s32.totalorder (!%p215_p9), %s791_s19, %s1151_s6 }
  0x12   : > { %p793_p11 = scmp.ne.s32.totalorder (!%p215_p9), %s791_s19, %s792_s20  ;;  %p798_p1 = scmp.lt.s32.totalorder (!%p215_p9), %s796_s28, %s792_s20 }
  0x13   : > { %s244_s9 = scalar_select %p243_p10, %s897_s25, 1  ;;  %v247_v0 = vld [vmem:[%s1146_s1] sm:$0xff]  ;;  %vm298_vm0 = vcmask 64512   ;;  %v258_v1 = vld [vmem:[%s1146_s1 + $0x58] sm:$0xff]  ;;  %v248_v3 = vld [vmem:[%s1146_s1 + $0x8] sm:$0xff]  ;;  %v840_v36 = vmov 0  }
  0x14   : > { %v259_v4 = vld [vmem:[%s1146_s1 + $0x60] sm:$0xff]  ;;  %v249_v5 = vld [vmem:[%s1146_s1 + $0x10] sm:$0xff]  ;;  %v260_v6 = vld [vmem:[%s1146_s1 + $0x68] sm:$0xff]  ;;  %773 = vset.pattern.permute.xlu0 %v840_v36  ;;  %774 = vset.pattern.permute.xlu1 %v840_v36  ;;  %p794_p12 = pnand %p793_p11, %p914_p5  ;;  %p799_p2 = por %p798_p1, %p797_p0 }
  0x15   : > { %s695_s10 = sshll.u32 %s244_s9, 3  ;;  %v250_v7 = vld [vmem:[%s1146_s1 + $0x18] sm:$0xff]  ;;  %v261_v8 = vld [vmem:[%s1146_s1 + $0x70] sm:$0xff]  ;;  %v251_v9 = vld [vmem:[%s1146_s1 + $0x20] sm:$0xff]  ;;  %775 = vset.pattern.permute.xlu2 %v840_v36  ;;  %s240_s9 = sand.u32 1, %s830_s22  }
  0x16   : > { %s246_s13 = scalar_lea.vmem %s1145_s0, %s695_s10  ;;  %v262_v10 = vld [vmem:[%s1146_s1 + $0x78] sm:$0xff]  ;;  %v252_v11 = vld [vmem:[%s1146_s1 + $0x28] sm:$0xff]  ;;  %v253_v12 = vld [vmem:[%s1146_s1 + $0x30] sm:$0xff]  ;;  %s694_s10 = sshll.u32 %s240_s9, 1 }
  0x17   : > { %v297_v2 = vld [vmem:[%s246_s13] sm:$0xff]  ;;  %v254_v13 = vld [vmem:[%s1146_s1 + $0x38] sm:$0xff]  ;;  %v256_v15 = vld [vmem:[%s1146_s1 + $0x48] sm:$0xff]  ;;  %s242_s15 = scalar_lea.vmem [#allocation2], %s694_s10  ;;  %s616_s18 = scalar_lea.sflag [#allocation3], %s240_s9 }
  0x18   : > { %362 = vmatpush.msra.mxu0 %v297_v2  ;;  %716 = vmatpush.msra.mxu2 %v297_v2  ;;  %v255_v14 = vld [vmem:[%s1146_s1 + $0x40] sm:$0xff]  ;;  %v257_v16 = vld [vmem:[%s1146_s1 + $0x50] sm:$0xff]  ;;  %v294_v37 = vld [vmem:[%s1148_s3 + $0x78] sm:$0xff]  ;;  %s628_s16 = sshll.u32 %s242_s15, 4  ;;  %p795_p13 = pneg %p794_p12  ;;  %s629_s16 = int_to_ptr.vmem [resolvable:$true] %s628_s16 }
  0x19   : > { %696 = vmatmul.msk.f32.vlgmr.msra.gmra.mxu0 %vm298_vm0, %v247_v0  ;;  %707 = vmatmul.msk.f32.vlgmr.msra.gmra.mxu2 %vm298_vm0, %v258_v1  ;;  %v292_v39 = vld [vmem:[%s1148_s3 + $0x68] sm:$0xff]  ;;  %v293_v40 = vld [vmem:[%s1148_s3 + $0x70] sm:$0xff]  ;;  %v291_v42 = vld [vmem:[%s1148_s3 + $0x60] sm:$0xff] }
  0x1a   : > { %505 = vperm.xlu0 %773, %v294_v37   ;;  %495 = vperm.xlu1 %774, %v292_v39   ;;  %v288_v43 = vld [vmem:[%s1148_s3 + $0x48] sm:$0xff]  ;;  %v287_v48 = vld [vmem:[%s1148_s3 + $0x40] sm:$0xff]  ;;  %v285_v49 = vld [vmem:[%s1148_s3 + $0x30] sm:$0xff]  ;;  %p800_p3 = pnand %p799_p2, %p795_p13 }
  0x1b   : > { %v282_v54 = vld [vmem:[%s1148_s3 + $0x18] sm:$0xff]  ;;  %v271_v58 = vld [vmem:[%s1147_s2 + $0x40] sm:$0xff]  ;;  %v272_v62 = vld [vmem:[%s1147_s2 + $0x48] sm:$0xff] }
  0x1c   : > { %v263_v59 = vld [vmem:[%s1147_s2] sm:$0xff]  ;;  %v290_v60 = vld [vmem:[%s1148_s3 + $0x58] sm:$0xff]  ;;  %v264_v63 = vld [vmem:[%s1147_s2 + $0x8] sm:$0xff] }
  0x1d   : > { %v279_v61 = vld [vmem:[%s1148_s3] sm:$0xff]  ;;  %485 = vperm.xlu2 %775, %v290_v60   ;;  %v289_v0 = vld [vmem:[%s1148_s3 + $0x50] sm:$0xff]  ;;  %v284_v1 = vld [vmem:[%s1148_s3 + $0x28] sm:$0xff] }
  0x1e   : > { %v273_v2 = vld [vmem:[%s1147_s2 + $0x50] sm:$0xff] }
  0x21   : > { %697 = vmatmul.msk.f32.gmra.mxu0 %vm298_vm0, %v248_v3  ;;  %708 = vmatmul.msk.f32.gmra.mxu2 %vm298_vm0, %v259_v4  ;;  %v265_v3 = vld [vmem:[%s1147_s2 + $0x10] sm:$0xff]  ;;  %v286_v4 = vld [vmem:[%s1148_s3 + $0x38] sm:$0xff] }
  0x22   : > { %500 = vperm.xlu0 %773, %v293_v40   ;;  %490 = vperm.xlu1 %774, %v291_v42  }
  0x25   : > { %480 = vperm.xlu2 %775, %v289_v0  }
  0x29   : > { %698 = vmatmul.msk.f32.gmra.mxu0 %vm298_vm0, %v249_v5  ;;  %709 = vmatmul.msk.f32.gmra.mxu2 %vm298_vm0, %v260_v6  ;;  %v281_v5 = vld [vmem:[%s1148_s3 + $0x10] sm:$0xff]  ;;  %v274_v6 = vld [vmem:[%s1147_s2 + $0x58] sm:$0xff] }
  0x2a   : > { %475 = vperm.xlu0 %773, %v288_v43   ;;  %470 = vperm.xlu1 %774, %v287_v48  }
  0x2d   : > { %465 = vperm.xlu2 %775, %v286_v4  }
  0x31   : > { %699 = vmatmul.msk.f32.gmra.mxu0 %vm298_vm0, %v250_v7  ;;  %710 = vmatmul.msk.f32.gmra.mxu2 %vm298_vm0, %v261_v8  ;;  %v266_v7 = vld [vmem:[%s1147_s2 + $0x18] sm:$0xff]  ;;  %v283_v8 = vld [vmem:[%s1148_s3 + $0x20] sm:$0xff] }
  0x32   : > { %460 = vperm.xlu0 %773, %v285_v49   ;;  %455 = vperm.xlu1 %774, %v284_v1  }
  0x35   : > { %450 = vperm.xlu2 %775, %v283_v8  }
  0x39   : > { %700 = vmatmul.msk.f32.gmra.mxu0 %vm298_vm0, %v251_v9  ;;  %711 = vmatmul.msk.f32.gmra.mxu2 %vm298_vm0, %v262_v10  ;;  %v296_v9 = vld [vmem:[%s1150_s5] sm:$0x3] }
  0x3a   : > { %445 = vperm.xlu0 %773, %v282_v54   ;;  %440 = vperm.xlu1 %774, %v281_v5   ;;  %v275_v10 = vld [vmem:[%s1147_s2 + $0x60] sm:$0xff] }
  0x41   : > { %701 = vmatmul.msk.f32.gmra.mxu0 %vm298_vm0, %v252_v11  ;;  %v267_v11 = vld [vmem:[%s1147_s2 + $0x20] sm:$0xff] }
  0x42   : > { %430 = vperm.xlu0 %773, %v279_v61   ;;  %591 = vperm.xlu1 %774, %v296_v9  }
  0x49   : > { %702 = vmatmul.msk.f32.gmra.mxu0 %vm298_vm0, %v253_v12  ;;  %v280_v12 = vld [vmem:[%s1148_s3 + $0x8] sm:$0xff] }
  0x4a   : > { %435 = vperm.xlu2 %775, %v280_v12  }
  0x51   : > { %703 = vmatmul.msk.f32.gmra.mxu0 %vm298_vm0, %v254_v13  ;;  %v276_v13 = vld [vmem:[%s1147_s2 + $0x68] sm:$0xff] }
  0x59   : > { %704 = vmatmul.msk.f32.gmra.mxu0 %vm298_vm0, %v255_v14  ;;  %v268_v14 = vld [vmem:[%s1147_s2 + $0x28] sm:$0xff] }
  0x61   : > { %705 = vmatmul.msk.f32.gmra.mxu0 %vm298_vm0, %v256_v15  ;;  %v277_v15 = vld [vmem:[%s1147_s2 + $0x70] sm:$0xff] }
  0x69   : > { %706 = vmatmul.msk.f32.gmra.mxu0 %vm298_vm0, %v257_v16  ;;  %v269_v16 = vld [vmem:[%s1147_s2 + $0x30] sm:$0xff] }
  0x96   : > { %v993_v17 = vpop.f32.mrf.mxu0 }
  0x97   : > { %v412_v57 = vmax.f32 %v993_v17, 0.0  ;;  %v278_v17 = vld [vmem:[%s1147_s2 + $0x78] sm:$0xff] }
  0x9c   : > { %v397_v18 = vpop.f32.mrf.mxu2 }
  0x9d   : > { %v423_v32 = vmax.f32 %v397_v18, 0.0  ;;  %v270_v18 = vld [vmem:[%s1147_s2 + $0x38] sm:$0xff] }
  0x9e   : > { %v995_v19 = vpop.f32.mrf.mxu0 }
  0x9f   : > { %v413_v56 = vmax.f32 %v995_v19, 0.0 }
  0xa4   : > { %v400_v20 = vpop.f32.mrf.mxu2 }
  0xa5   : > { %v424_v31 = vmax.f32 %v400_v20, 0.0 }
  0xa6   : > { %v997_v21 = vpop.f32.mrf.mxu0 }
  0xa7   : > { %v414_v55 = vmax.f32 %v997_v21, 0.0 }
  0xac   : > { %v403_v22 = vpop.f32.mrf.mxu2 }
  0xad   : > { %v425_v30 = vmax.f32 %v403_v22, 0.0 }
  0xae   : > { %v999_v23 = vpop.f32.mrf.mxu0 }
  0xaf   : > { %v415_v53 = vmax.f32 %v999_v23, 0.0 }
  0xb4   : > { %v406_v24 = vpop.f32.mrf.mxu2 }
  0xb5   : > { %v426_v27 = vmax.f32 %v406_v24, 0.0 }
  0xb6   : > { %v376_v25 = vpop.f32.mrf.mxu0 }
  0xb7   : > { %v416_v52 = vmax.f32 %v376_v25, 0.0 }
  0xbc   : > { %v409_v26 = vpop.f32.mrf.mxu2 }
  0xbd   : > { %v427_v28 = vmax.f32 %v409_v26, 0.0 }
  0xbe   : > { %v379_v29 = vpop.f32.mrf.mxu0 }
  0xbf   : > { %508 = vmatpush.msra.mxu1 %v427_v28  ;;  %717 = vmatpush.msra.mxu3 %v427_v28  ;;  %v417_v51 = vmax.f32 %v379_v29, 0.0 }
  0xc1   : > { %509 = vmatpush.msra.mxu1 %v426_v27  ;;  %718 = vmatpush.msra.mxu3 %v426_v27  ;;  %v506_v27 = vpop.permute.xlu0 %505 }
  0xc3   : > { %510 = vmatpush.msra.mxu1 %v425_v30  ;;  %719 = vmatpush.msra.mxu3 %v425_v30  ;;  %v496_v30 = vpop.permute.xlu1 %495 }
  0xc5   : > { %511 = vmatpush.msra.mxu1 %v424_v31  ;;  %720 = vmatpush.msra.mxu3 %v424_v31  ;;  %v486_v31 = vpop.permute.xlu2 %485 }
  0xc6   : > { %v382_v33 = vpop.f32.mrf.mxu0 }
  0xc7   : > { %512 = vmatpush.msra.mxu1 %v423_v32  ;;  %721 = vmatpush.msra.mxu3 %v423_v32  ;;  %v418_v50 = vmax.f32 %v382_v33, 0.0 }
  0xc9   : > { %v501_v33 = vpop.permute.xlu0 %500 }
  0xcb   : > { %v491_v36 = vpop.permute.xlu1 %490 }
  0xcd   : > { %v481_v37 = vpop.permute.xlu2 %480 }
  0xce   : > { %v385_v34 = vpop.f32.mrf.mxu0 }
  0xcf   : > { %v419_v47 = vmax.f32 %v385_v34, 0.0 }
  0xd6   : > { %v388_v35 = vpop.f32.mrf.mxu0 }
  0xd7   : > { %v420_v46 = vmax.f32 %v388_v35, 0.0 }
  0xde   : > { %v391_v38 = vpop.f32.mrf.mxu0 }
  0xdf   : > { %v421_v45 = vmax.f32 %v391_v38, 0.0  ;;  %v476_v38 = vpop.permute.xlu0 %475 }
  0xe6   : > { %v394_v41 = vpop.f32.mrf.mxu0 }
  0xe7   : > { %v422_v44 = vmax.f32 %v394_v41, 0.0  ;;  %v461_v49 = vpop.permute.xlu0 %460 }
  0xe9   : > { %513 = vmatpush.msra.mxu1 %v422_v44  ;;  %722 = vmatpush.msra.mxu3 %v422_v44 }
  0xeb   : > { %514 = vmatpush.msra.mxu1 %v421_v45  ;;  %723 = vmatpush.msra.mxu3 %v421_v45  ;;  %v471_v45 = vpop.permute.xlu1 %470 }
  0xed   : > { %515 = vmatpush.msra.mxu1 %v420_v46  ;;  %724 = vmatpush.msra.mxu3 %v420_v46  ;;  %v466_v46 = vpop.permute.xlu2 %465 }
  0xef   : > { %516 = vmatpush.msra.mxu1 %v419_v47  ;;  %725 = vmatpush.msra.mxu3 %v419_v47 }
  0xf1   : > { %517 = vmatpush.msra.mxu1 %v418_v50  ;;  %726 = vmatpush.msra.mxu3 %v418_v50 }
  0xf3   : > { %518 = vmatpush.msra.mxu1 %v417_v51  ;;  %727 = vmatpush.msra.mxu3 %v417_v51 }
  0xf5   : > { %519 = vmatpush.msra.mxu1 %v416_v52  ;;  %728 = vmatpush.msra.mxu3 %v416_v52  ;;  %v451_v60 = vpop.permute.xlu2 %450 }
  0xf7   : > { %520 = vmatpush.msra.mxu1 %v415_v53  ;;  %729 = vmatpush.msra.mxu3 %v415_v53 }
  0xf9   : > { %521 = vmatpush.msra.mxu1 %v414_v55  ;;  %730 = vmatpush.msra.mxu3 %v414_v55 }
  0xfb   : > { %522 = vmatpush.msra.mxu1 %v413_v56  ;;  %731 = vmatpush.msra.mxu3 %v413_v56  ;;  %v456_v56 = vpop.permute.xlu1 %455 }
  0xfd   : > { %523 = vmatpush.msra.mxu1 %v412_v57  ;;  %732 = vmatpush.msra.mxu3 %v412_v57  ;;  %v436_v9 = vpop.permute.xlu2 %435 }
  0xfe   : > { %548 = vmatmul.f32.vlgmr.msra.gmra.mxu3 %v271_v58  ;;  %524 = vmatmul.f32.vlgmr.msra.gmra.mxu1 %v263_v59 }
 0x106   : > { %551 = vmatmul.f32.gmra.mxu3 %v272_v62  ;;  %527 = vmatmul.f32.gmra.mxu1 %v264_v63  ;;  %v446_v63 = vpop.permute.xlu0 %445 }
 0x10e   : > { %554 = vmatmul.f32.gmra.mxu3 %v273_v2  ;;  %530 = vmatmul.f32.gmra.mxu1 %v265_v3  ;;  %v431_v12 = vpop.permute.xlu0 %430 }
 0x116   : > { %557 = vmatmul.f32.gmra.mxu3 %v274_v6  ;;  %533 = vmatmul.f32.gmra.mxu1 %v266_v7  ;;  %v441_v6 = vpop.permute.xlu1 %440 }
 0x11e   : > { %560 = vmatmul.f32.gmra.mxu3 %v275_v10  ;;  %536 = vmatmul.f32.gmra.mxu1 %v267_v11 }
 0x126   : > { %563 = vmatmul.f32.gmra.mxu3 %v276_v13  ;;  %539 = vmatmul.f32.gmra.mxu1 %v268_v14 }
 0x12e   : > { %566 = vmatmul.f32.gmra.mxu3 %v277_v15  ;;  %542 = vmatmul.f32.gmra.mxu1 %v269_v16 }
 0x136   : > { %569 = vmatmul.f32.gmra.mxu3 %v278_v17  ;;  %545 = vmatmul.f32.gmra.mxu1 %v270_v18 }
 0x17b   : > { %v1104_v19 = vpop.f32.mrf.mxu1 }
 0x17c   : > { %v526_v15 = vadd.f32 %v1104_v19, %v431_v12  ;;  %v592_v19 = vpop.permute.xlu1 %591 }
 0x17e   : > { %v573_v18 = vmax.f32 %v526_v15, 0.0 }
 0x181   : > { %v549_v20 = vpop.f32.mrf.mxu3 }
 0x182   : > { %v550_v58 = vadd.f32 %v549_v20, %v471_v45  ;;  %v295_v20 = vld [vmem:[%s1149_s4] sm:$0x3] }
 0x183   : > { %v1106_v22 = vpop.f32.mrf.mxu1 }
 0x184   : > { %v581_v0 = vmax.f32 %v550_v58, 0.0  ;;  %v529_v14 = vadd.f32 %v1106_v22, %v436_v9 }
 0x186   : > { %v574_v17 = vmax.f32 %v529_v14, 0.0 }
 0x189   : > { %v552_v21 = vpop.f32.mrf.mxu3 }
 0x18a   : > { %v553_v54 = vadd.f32 %v552_v21, %v476_v38 }
 0x18b   : > { %v531_v24 = vpop.f32.mrf.mxu1 }
 0x18c   : > { %v582_v61 = vmax.f32 %v553_v54, 0.0  ;;  %v532_v11 = vadd.f32 %v531_v24, %v441_v6 }
 0x18e   : > { %v575_v16 = vmax.f32 %v532_v11, 0.0 }
 0x191   : > { %v555_v23 = vpop.f32.mrf.mxu3 }
 0x192   : > { %v556_v52 = vadd.f32 %v555_v23, %v481_v37 }
 0x193   : > { %v534_v26 = vpop.f32.mrf.mxu1 }
 0x194   : > { %v583_v59 = vmax.f32 %v556_v52, 0.0  ;;  %v535_v7 = vadd.f32 %v534_v26, %v446_v63 }
 0x196   : > { %v576_v13 = vmax.f32 %v535_v7, 0.0 }
 0x199   : > { %v558_v25 = vpop.f32.mrf.mxu3 }
 0x19a   : > { %v559_v50 = vadd.f32 %v558_v25, %v486_v31 }
 0x19b   : > { %v537_v29 = vpop.f32.mrf.mxu1 }
 0x19c   : > { %v584_v55 = vmax.f32 %v559_v50, 0.0  ;;  %v538_v4 = vadd.f32 %v537_v29, %v451_v60 }
 0x19e   : > { %v577_v10 = vmax.f32 %v538_v4, 0.0 }
 0x1a1   : > { %v561_v28 = vpop.f32.mrf.mxu3 }
 0x1a2   : > { %v562_v47 = vadd.f32 %v561_v28, %v491_v36 }
 0x1a3   : > { %v540_v34 = vpop.f32.mrf.mxu1 }
 0x1a4   : > { %v585_v53 = vmax.f32 %v562_v47, 0.0  ;;  %v541_v2 = vadd.f32 %v540_v34, %v456_v56 }
 0x1a6   : > { %v578_v8 = vmax.f32 %v541_v2, 0.0 }
 0x1a9   : > { %v564_v32 = vpop.f32.mrf.mxu3 }
 0x1aa   : > { %v565_v43 = vadd.f32 %v564_v32, %v496_v30 }
 0x1ab   : > { %v543_v42 = vpop.f32.mrf.mxu1 }
 0x1ac   : > { %v586_v51 = vmax.f32 %v565_v43, 0.0  ;;  %v544_v1 = vadd.f32 %v543_v42, %v461_v49 }
 0x1ae   : > { %v579_v5 = vmax.f32 %v544_v1, 0.0 }
 0x1b1   : > { %v567_v35 = vpop.f32.mrf.mxu3 }
 0x1b2   : > { %v568_v40 = vadd.f32 %v567_v35, %v501_v33 }
 0x1b3   : > { %v546_v57 = vpop.f32.mrf.mxu1 }
 0x1b4   : > { %v587_v48 = vmax.f32 %v568_v40, 0.0  ;;  %v547_v62 = vadd.f32 %v546_v57, %v466_v46 }
 0x1b6   : > { %v580_v3 = vmax.f32 %v547_v62, 0.0 }
 0x1b9   : > { %v570_v39 = vpop.f32.mrf.mxu3 }
 0x1ba   : > { %v571_v41 = vadd.f32 %v570_v39, %v506_v27 }
 0x1bc   : > { %v588_v44 = vmax.f32 %v571_v41, 0.0 }
 0x1be   : > { %594 = vmatpush.msrb.mxu2 %v588_v44 }
 0x1c0   : > { %595 = vmatpush.msrb.mxu2 %v587_v48 }
 0x1c2   : > { %596 = vmatpush.msrb.mxu2 %v586_v51 }
 0x1c4   : > { %597 = vmatpush.msrb.mxu2 %v585_v53 }
 0x1c6   : > { %598 = vmatpush.msrb.mxu2 %v584_v55 }
 0x1c8   : > { %599 = vmatpush.msrb.mxu2 %v583_v59 }
 0x1ca   : > { %600 = vmatpush.msrb.mxu2 %v582_v61 }
 0x1cc   : > { %601 = vmatpush.msrb.mxu2 %v581_v0 }
 0x1ce   : > { %602 = vmatpush.msrb.mxu2 %v580_v3 }
 0x1d0   : > { %603 = vmatpush.msrb.mxu2 %v579_v5 }
 0x1d2   : > { %604 = vmatpush.msrb.mxu2 %v578_v8 }
 0x1d4   : > { %605 = vmatpush.msrb.mxu2 %v577_v10 }
 0x1d6   : > { %606 = vmatpush.msrb.mxu2 %v576_v13 }
 0x1d8   : > { %607 = vmatpush.msrb.mxu2 %v575_v16 }
 0x1da   : > { %608 = vmatpush.msrb.mxu2 %v574_v17 }
 0x1dc   : > { %609 = vmatpush.msrb.mxu2 %v573_v18 }
 0x1dd   : > { %610 = vmatmul.f32.vlgmr.msrb.gmra.mxu2 %v295_v20 }
 0x260   : > { %v611_v21 = vpop.f32.mrf.mxu2 }
 0x261   : > { %v612_v22 = vadd.f32 %v611_v21, %v592_v19 }
 0x263   : > { %614 = vst [vmem:[%s242_s15] sm:$0x3] %v612_v22 }
 0x264   : > { %803 = shalt.err (!%p800_p3)
}
 0x265   : > { %733 = dma.vmem_to_hbm [thread:$0]  (%p914_p5), %s629_s16, 32, %s631_s17, %s616_s18  }
 0x266 PF: > { %p739_p4 = scmp.ge.s32.totalorder %s838_s24, 2  ;;  %s642_s9 = sand.u32 1, %s826_s21  }
 0x267   : > { %s643_s11 = scalar_lea.sflag [#allocation3], %s642_s9 }
 0x268   : > { %p736_p7 = pnand %p739_p4, %p918_p6 }
 0x26a   : > { %p737_p8 = pneg %p736_p7 }
 0x26c   : > { %821 = dma.done.wait (%p737_p8), %s643_s11, 32  }
 0x26d   : > { %823 = vsyncadd (%p737_p8), %s643_s11, 4294967264  ;;  %p16_p9 = scmp.ge.s32.totalorder %s901_s27, 4   ;;  %s1154_s21 = smov %s830_s22 }
 0x26e   : > { %s1155_s22 = smov %s834_s23  ;;  %s1156_s23 = smov %s912_s30 }
 0x26f   : > { %s1157_s24 = smov %s901_s27  ;;  %18 = sbr.rel (!%p16_p9) target bundleno = 3 (0x3), region = 79 }
 0x274   :  { %649 = vsyncpa [#allocation3], 1 }
 0x275   :  { %651 = vsyncpa [#allocation3 + $0x1], 1 }

</bundles_post_ra>
